<compile_context>
chip_gen: v7x
topology: tpu7x:2x2x1
jax: 0.10.0
libtpu: 0.0.40
codegen_flags: <defaults>
</compile_context>

<pallas_src>
import functools

import numpy as np

import jax
import jax.numpy as jnp
from jax import lax
from jax.experimental import pallas as pl
from jax.experimental.pallas import tpu as pltpu


def _upsample_block_kernel(x_ref, sk_ref, rh_ref, w1_ref, w2_ref, bn_ref, o_ref, *, h2):
    """Fused upsample+concat+conv1+BN1+ReLU -> conv2+BN2+ReLU for one batch tile.

    x_ref : (nb*H,  W*Cx)            bf16  stacked input rows, lane = w*Cx + cx
    sk_ref: (nb*H2, W2*Cs)           bf16  stacked skip rows,  lane = w2*Cs + cs
    rh_ref: (nb*H2, nb*H)            bf16  block-diag 0/1 nearest row-doubling matrix
    w1_ref: (3, W2*Cs + W*Cx, W2*Cout) bf16 conv1 banded weights, K order = [skip | x]
    w2_ref: (3, W2*Cout, W2*Cout)    bf16  conv2 banded weights
    bn_ref: (8, W2*Cout)             f32   rows 0..3 = s1, b1, s2, b2 (folded eval BN)
    o_ref : (nb*H2, W2*Cout)         f32   stacked output rows, lane = w2*Cout + co
    """
    f32 = jnp.float32
    bf16 = jnp.bfloat16
    m2 = o_ref.shape[0]  # nb * H2

    def row_taps(v):
        # v: (m2, L) f32, rows = nb images stacked, h2 rows per image.
        # Returns the kh = 0, 1, 2 row taps of a 3x3 conv with zero H-padding:
        # rows r-1 / r / r+1, with per-image top/bottom boundary rows zeroed.
        r = lax.broadcasted_iota(jnp.int32, v.shape, 0) % h2
        top = jnp.where(r == 0, 0.0, pltpu.roll(v, 1, 0))            # row r-1
        bot = jnp.where(r == h2 - 1, 0.0, pltpu.roll(v, m2 - 1, 0))  # row r+1
        return top, v, bot

    # nearest 2x row-upsample as a single 0/1 matmul (exact; f32 accumulate)
    xup = jnp.dot(rh_ref[...], x_ref[...], preferred_element_type=f32)

    # conv1 operand: [skip | upsampled x] lane concat (skip half is 128-lane aligned,
    # so the concat needs no lane rotation); the W-taps / W-upsample / zero-pad /
    # channel-concat are already folded into the banded weights.
    cat = jnp.concatenate([sk_ref[...].astype(f32), xup], axis=1)

    # conv1: 3 row-tap banded matmuls (bf16 operands, f32 acc), folded BN1 + ReLU
    t0, t1, t2 = row_taps(cat)
    acc = (jnp.dot(t0.astype(bf16), w1_ref[0], preferred_element_type=f32)
           + jnp.dot(t1.astype(bf16), w1_ref[1], preferred_element_type=f32)
           + jnp.dot(t2.astype(bf16), w1_ref[2], preferred_element_type=f32))
    mid = jnp.maximum(acc * bn_ref[0:1, :] + bn_ref[1:2, :], 0.0)

    # conv2: 3 row-tap banded matmuls, folded BN2 + ReLU, full-lane store
    p0, p1, p2 = row_taps(mid)
    acc2 = (jnp.dot(p0.astype(bf16), w2_ref[0], preferred_element_type=f32)
            + jnp.dot(p1.astype(bf16), w2_ref[1], preferred_element_type=f32)
            + jnp.dot(p2.astype(bf16), w2_ref[2], preferred_element_type=f32))
    o_ref[...] = jnp.maximum(acc2 * bn_ref[2:3, :] + bn_ref[3:4, :], 0.0).astype(o_ref.dtype)


def _band_selectors(W, W2):
    """0/1 selectors mapping the 3 W-taps of a zero-padded (and, for x, 2x
    nearest-upsampled) row onto source columns.  S_x: (3, W, W2), S_s: (3, W2, W2)."""
    S_x = np.zeros((3, W, W2), np.float32)
    S_s = np.zeros((3, W2, W2), np.float32)
    for kw in range(3):
        for w2 in range(W2):
            c = w2 + kw - 1              # column in the zero-padded (upsampled) row
            if 0 <= c < W2:
                S_x[kw, c // 2, w2] = 1.0   # nearest W-upsample: source col = c // 2
                S_s[kw, c, w2] = 1.0
    return S_x, S_s


def upsample_block_forward(x_nchw, skip_nchw, w1_oihw, w2_oihw,
                           bn1_gamma, bn1_beta, bn1_mean, bn1_var,
                           bn2_gamma, bn2_beta, bn2_mean, bn2_var,
                           eps=1e-5):
    """Equivalent of UpsampleBlock(parametric=False, use_bn=True).forward (eval BN)."""
    N, Cx, H, W = x_nchw.shape
    H2, W2 = 2 * H, 2 * W
    Cs = skip_nchw.shape[1]
    Cout = w1_oihw.shape[0]

    # Batch tile: as many images per grid step as evenly divide N (cap M ~ 256 rows).
    nb = 1
    for cand in (8, 4, 2):
        if N % cand == 0:
            nb = cand
            break
    nb = min(nb, N)
    grid = (N // nb,)

    # Activations: NCHW -> NHWC -> row-stacked lane-dense 2D, bf16 (half the DMA).
    x_rows = jnp.transpose(x_nchw, (0, 2, 3, 1)).reshape(N * H, W * Cx).astype(jnp.bfloat16)
    sk_rows = jnp.transpose(skip_nchw, (0, 2, 3, 1)).reshape(N * H2, W2 * Cs).astype(jnp.bfloat16)

    # ---- per-layer constants (in deployment these are precomputed once) ----
    # Block-diagonal nearest row-doubling matrix for one batch tile.
    rh_np = np.zeros((nb * H2, nb * H), np.float32)
    for b in range(nb):
        r2 = np.arange(H2)
        rh_np[b * H2 + r2, b * H + r2 // 2] = 1.0
    rh = jnp.asarray(rh_np, jnp.bfloat16)

    # Row-banded weights folding the W-taps, W zero-pad, nearest W-upsample and
    # the channel concat: [kh, src_col*Cin + ci, w2*Cout + co].
    S_x, S_s = _band_selectors(W, W2)
    w1 = w1_oihw.astype(jnp.float32)   # OIHW; in-channels = [x | skip]
    w2 = w2_oihw.astype(jnp.float32)
    w1x_b = jnp.einsum('kvw,ochk->hvcwo', jnp.asarray(S_x), w1[:, :Cx]).reshape(3, W * Cx, W2 * Cout)
    w1s_b = jnp.einsum('kvw,ochk->hvcwo', jnp.asarray(S_s), w1[:, Cx:]).reshape(3, W2 * Cs, W2 * Cout)
    w1_b = jnp.concatenate([w1s_b, w1x_b], axis=1).astype(jnp.bfloat16)   # K order = [skip | x]
    w2_b = jnp.einsum('kvw,ochk->hvcwo', jnp.asarray(S_s), w2).reshape(
        3, W2 * Cout, W2 * Cout).astype(jnp.bfloat16)

    # Eval-mode BatchNorm folded to per-channel scale/bias, tiled over the lane
    # layout and packed into one aligned (8, lanes) tile: rows = s1, b1, s2, b2.
    s1v = (bn1_gamma / jnp.sqrt(bn1_var + eps)).astype(jnp.float32)
    b1v = (bn1_beta - bn1_mean * s1v).astype(jnp.float32)
    s2v = (bn2_gamma / jnp.sqrt(bn2_var + eps)).astype(jnp.float32)
    b2v = (bn2_beta - bn2_mean * s2v).astype(jnp.float32)
    bn_pack = jnp.zeros((8, W2 * Cout), jnp.float32)
    bn_pack = bn_pack.at[0].set(jnp.tile(s1v, W2)).at[1].set(jnp.tile(b1v, W2))
    bn_pack = bn_pack.at[2].set(jnp.tile(s2v, W2)).at[3].set(jnp.tile(b2v, W2))

    kernel = functools.partial(_upsample_block_kernel, h2=H2)

    out_rows = pl.pallas_call(
        kernel,
        out_shape=jax.ShapeDtypeStruct((N * H2, W2 * Cout), jnp.float32),
        grid_spec=pltpu.PrefetchScalarGridSpec(
            num_scalar_prefetch=0,
            grid=grid,
            in_specs=[
                pl.BlockSpec((nb * H, W * Cx), lambda n: (n, 0)),
                pl.BlockSpec((nb * H2, W2 * Cs), lambda n: (n, 0)),
                pl.BlockSpec((nb * H2, nb * H), lambda n: (0, 0)),
                pl.BlockSpec((3, W2 * Cs + W * Cx, W2 * Cout), lambda n: (0, 0, 0)),
                pl.BlockSpec((3, W2 * Cout, W2 * Cout), lambda n: (0, 0, 0)),
                pl.BlockSpec((8, W2 * Cout), lambda n: (0, 0)),
            ],
            out_specs=pl.BlockSpec((nb * H2, W2 * Cout), lambda n: (n, 0)),
        ),
        compiler_params=pltpu.CompilerParams(
            dimension_semantics=("parallel",),
        ),
    )(x_rows, sk_rows, rh, w1_b, w2_b, bn_pack)

    # (N*H2, W2*Cout) -> (N, Cout, H2, W2) to match PyTorch
    return jnp.transpose(out_rows.reshape(N, H2, W2, Cout), (0, 3, 1, 2))


def _reference_forward(x_nchw, skip_nchw, w1_oihw, w2_oihw,
                       bn1_gamma, bn1_beta, bn1_mean, bn1_var,
                       bn2_gamma, bn2_beta, bn2_mean, bn2_var, eps=1e-5):
    """Pure-JAX reference (mirrors the PyTorch forward, eval-mode BN)."""
    x = jnp.repeat(jnp.repeat(x_nchw, 2, axis=2), 2, axis=3)
    x = jnp.concatenate([x, skip_nchw], axis=1)
    dn = ('NCHW', 'OIHW', 'NCHW')

    def bn(z, g, b, m, v):
        s = g / jnp.sqrt(v + eps)
        return z * s[None, :, None, None] + (b - m * s)[None, :, None, None]

    y = lax.conv_general_dilated(x, w1_oihw, (1, 1), ((1, 1), (1, 1)),
                                 dimension_numbers=dn,
                                 precision=lax.Precision.HIGHEST)
    y = jnp.maximum(bn(y, bn1_gamma, bn1_beta, bn1_mean, bn1_var), 0.0)
    z = lax.conv_general_dilated(y, w2_oihw, (1, 1), ((1, 1), (1, 1)),
                                 dimension_numbers=dn,
                                 precision=lax.Precision.HIGHEST)
    z = jnp.maximum(bn(z, bn2_gamma, bn2_beta, bn2_mean, bn2_var), 0.0)
    return z


if __name__ == "__main__":
    # UpsampleBlock(in_channels=4, out_channels=4, skip_in=4, use_bn=True, parametric=False)
    N, Cx, H, W = 2, 4, 16, 16
    skip_in = 4
    Cout = 4
    Cin_conv1 = Cx + skip_in

    key = jax.random.PRNGKey(0)
    ks = jax.random.split(key, 10)

    x = jax.random.normal(ks[0], (N, Cx, H, W), jnp.float32)
    skip = jax.random.normal(ks[1], (N, skip_in, 2 * H, 2 * W), jnp.float32)

    # conv weights (PyTorch OIHW layout, bias=False since use_bn=True)
    w1 = 0.1 * jax.random.normal(ks[2], (Cout, Cin_conv1, 3, 3), jnp.float32)
    w2 = 0.1 * jax.random.normal(ks[3], (Cout, Cout, 3, 3), jnp.float32)

    # BatchNorm2d parameters / running stats (eval mode)
    bn1_gamma = 1.0 + 0.1 * jax.random.normal(ks[4], (Cout,), jnp.float32)
    bn1_beta = 0.1 * jax.random.normal(ks[5], (Cout,), jnp.float32)
    bn1_mean = 0.1 * jax.random.normal(ks[6], (Cout,), jnp.float32)
    bn1_var = jnp.abs(1.0 + 0.1 * jax.random.normal(ks[7], (Cout,), jnp.float32))
    bn2_gamma = 1.0 + 0.1 * jax.random.normal(ks[8], (Cout,), jnp.float32)
    bn2_beta = 0.1 * jax.random.normal(ks[9], (Cout,), jnp.float32)
    bn2_mean = jnp.zeros((Cout,), jnp.float32)
    bn2_var = jnp.ones((Cout,), jnp.float32)

    out = upsample_block_forward(x, skip, w1, w2,
                                 bn1_gamma, bn1_beta, bn1_mean, bn1_var,
                                 bn2_gamma, bn2_beta, bn2_mean, bn2_var)
    out = jax.block_until_ready(out)

    ref = _reference_forward(x, skip, w1, w2,
                             bn1_gamma, bn1_beta, bn1_mean, bn1_var,
                             bn2_gamma, bn2_beta, bn2_mean, bn2_var)
    ref = jax.block_until_ready(ref)

    assert out.shape == (N, Cout, 2 * H, 2 * W), out.shape
    # bf16 operands with f32 accumulation vs HIGHEST-precision f32 reference
    np.testing.assert_allclose(np.asarray(out), np.asarray(ref), rtol=3e-2, atol=3e-2)

    print("KERNEL_OK")
</pallas_src>

<mosaic_0001>
module attributes {stable_mosaic.version = 11 : i64} {
  func.func @_upsample_block_kernel(%arg0: i32, %arg1: memref<32x64xbf16, #tpu.memory_space<vmem>>, %arg2: memref<64x128xbf16, #tpu.memory_space<vmem>>, %arg3: memref<64x32xbf16, #tpu.memory_space<vmem>>, %arg4: memref<3x192x128xbf16, #tpu.memory_space<vmem>>, %arg5: memref<3x128x128xbf16, #tpu.memory_space<vmem>>, %arg6: memref<8x128xf32, #tpu.memory_space<vmem>>, %arg7: memref<64x128xf32, #tpu.memory_space<vmem>>) attributes {dimension_semantics = [#tpu.dimension_semantics<parallel>], iteration_bounds = array<i64: 1>, scalar_prefetch = 0 : i64, scratch_operands = 0 : i64, tpu.core_type = #tpu.core_type<tc>, window_params = [{transform_indices = @transform_0, window_bounds = array<i64: 32, 64>}, {transform_indices = @transform_1, window_bounds = array<i64: 64, 128>}, {pipeline_mode = #tpu.pipeline_mode<synchronous>, transform_indices = @transform_2, window_bounds = array<i64: 64, 32>}, {pipeline_mode = #tpu.pipeline_mode<synchronous>, transform_indices = @transform_3, window_bounds = array<i64: 3, 192, 128>}, {pipeline_mode = #tpu.pipeline_mode<synchronous>, transform_indices = @transform_4, window_bounds = array<i64: 3, 128, 128>}, {pipeline_mode = #tpu.pipeline_mode<synchronous>, transform_indices = @transform_5, window_bounds = array<i64: 8, 128>}, {transform_indices = @transform_6, window_bounds = array<i64: 64, 128>}]} {
    %c0 = arith.constant 0 : index
    %c0_0 = arith.constant 0 : index
    %0 = vector.load %arg3[%c0, %c0_0] : memref<64x32xbf16, #tpu.memory_space<vmem>>, vector<64x32xbf16>
    %c0_1 = arith.constant 0 : index
    %c0_2 = arith.constant 0 : index
    %1 = vector.load %arg1[%c0_1, %c0_2] : memref<32x64xbf16, #tpu.memory_space<vmem>>, vector<32x64xbf16>
    %cst = arith.constant dense<0.000000e+00> : vector<64x64xf32>
    %2 = tpu.matmul %0, %1, %cst {dimension_numbers = #tpu.dot_dimension_numbers<[1], [0], [0], [1], [0, 0, 1, 1], [], []>} : vector<64x32xbf16>, vector<32x64xbf16>, vector<64x64xf32> -> vector<64x64xf32>
    %c0_3 = arith.constant 0 : index
    %c0_4 = arith.constant 0 : index
    %3 = vector.load %arg2[%c0_3, %c0_4] : memref<64x128xbf16, #tpu.memory_space<vmem>>, vector<64x128xbf16>
    %4 = arith.extf %3 : vector<64x128xbf16> to vector<64x128xf32>
    %5 = tpu.concatenate %4, %2 in 1 : vector<64x128xf32>, vector<64x64xf32> -> vector<64x192xf32>
    %6 = tpu.iota {dimensions = array<i32: 0>} : vector<64x192xi32>
    %c32_i32 = arith.constant 32 : i32
    %c0_i32 = arith.constant 0 : i32
    %7 = arith.cmpi eq, %c32_i32, %c0_i32 : i32
    %c1_i32 = arith.constant 1 : i32
    %8 = arith.select %7, %c1_i32, %c32_i32 : i32
    %9 = vector.broadcast %8 : i32 to vector<64x192xi32>
    %10 = arith.remsi %6, %9 : vector<64x192xi32>
    %c0_i32_5 = arith.constant 0 : i32
    %11 = vector.broadcast %c0_i32_5 : i32 to vector<64x192xi32>
    %12 = arith.cmpi ne, %10, %11 : vector<64x192xi32>
    %c0_i32_6 = arith.constant 0 : i32
    %13 = vector.broadcast %c0_i32_6 : i32 to vector<64x192xi32>
    %14 = arith.cmpi slt, %10, %13 : vector<64x192xi32>
    %c0_i32_7 = arith.constant 0 : i32
    %15 = arith.cmpi slt, %8, %c0_i32_7 : i32
    %16 = vector.broadcast %15 : i1 to vector<64x192xi1>
    %17 = vector.broadcast %16 : vector<64x192xi1> to vector<64x192xi1>
    %18 = arith.xori %14, %17 : vector<64x192xi1>
    %19 = arith.andi %18, %12 : vector<64x192xi1>
    %20 = vector.broadcast %8 : i32 to vector<64x192xi32>
    %21 = arith.addi %10, %20 : vector<64x192xi32>
    %22 = arith.select %19, %21, %10 : vector<64x192xi1>, vector<64x192xi32>
    %c0_i32_8 = arith.constant 0 : i32
    %23 = vector.broadcast %c0_i32_8 : i32 to vector<64x192xi32>
    %24 = arith.cmpi eq, %22, %23 : vector<64x192xi32>
    %c1_i32_9 = arith.constant 1 : i32
    %25 = tpu.dynamic_rotate %5 by %c1_i32_9 dim 0 : vector<64x192xf32>, i32 -> vector<64x192xf32>
    %cst_10 = arith.constant 0.000000e+00 : f32
    %26 = vector.broadcast %cst_10 : f32 to vector<64x192xf32>
    %27 = arith.select %24, %26, %25 : vector<64x192xi1>, vector<64x192xf32>
    %c31_i32 = arith.constant 31 : i32
    %28 = vector.broadcast %c31_i32 : i32 to vector<64x192xi32>
    %29 = arith.cmpi eq, %22, %28 : vector<64x192xi32>
    %c63_i32 = arith.constant 63 : i32
    %30 = tpu.dynamic_rotate %5 by %c63_i32 dim 0 : vector<64x192xf32>, i32 -> vector<64x192xf32>
    %cst_11 = arith.constant 0.000000e+00 : f32
    %31 = vector.broadcast %cst_11 : f32 to vector<64x192xf32>
    %32 = arith.select %29, %31, %30 : vector<64x192xi1>, vector<64x192xf32>
    %33 = arith.truncf %27 : vector<64x192xf32> to vector<64x192xbf16>
    %c0_12 = arith.constant 0 : index
    %c0_13 = arith.constant 0 : index
    %c0_14 = arith.constant 0 : index
    %34 = vector.load %arg4[%c0_12, %c0_13, %c0_14] : memref<3x192x128xbf16, #tpu.memory_space<vmem>>, vector<1x192x128xbf16>
    %35 = vector.shape_cast %34 : vector<1x192x128xbf16> to vector<192x128xbf16>
    %cst_15 = arith.constant dense<0.000000e+00> : vector<64x128xf32>
    %36 = tpu.matmul %33, %35, %cst_15 {dimension_numbers = #tpu.dot_dimension_numbers<[1], [0], [0], [1], [0, 0, 1, 1], [], []>} : vector<64x192xbf16>, vector<192x128xbf16>, vector<64x128xf32> -> vector<64x128xf32>
    %37 = arith.truncf %5 : vector<64x192xf32> to vector<64x192xbf16>
    %c1 = arith.constant 1 : index
    %c0_16 = arith.constant 0 : index
    %c0_17 = arith.constant 0 : index
    %38 = vector.load %arg4[%c1, %c0_16, %c0_17] : memref<3x192x128xbf16, #tpu.memory_space<vmem>>, vector<1x192x128xbf16>
    %39 = vector.shape_cast %38 : vector<1x192x128xbf16> to vector<192x128xbf16>
    %cst_18 = arith.constant dense<0.000000e+00> : vector<64x128xf32>
    %40 = tpu.matmul %37, %39, %cst_18 {dimension_numbers = #tpu.dot_dimension_numbers<[1], [0], [0], [1], [0, 0, 1, 1], [], []>} : vector<64x192xbf16>, vector<192x128xbf16>, vector<64x128xf32> -> vector<64x128xf32>
    %41 = arith.addf %36, %40 : vector<64x128xf32>
    %42 = arith.truncf %32 : vector<64x192xf32> to vector<64x192xbf16>
    %c2 = arith.constant 2 : index
    %c0_19 = arith.constant 0 : index
    %c0_20 = arith.constant 0 : index
    %43 = vector.load %arg4[%c2, %c0_19, %c0_20] : memref<3x192x128xbf16, #tpu.memory_space<vmem>>, vector<1x192x128xbf16>
    %44 = vector.shape_cast %43 : vector<1x192x128xbf16> to vector<192x128xbf16>
    %cst_21 = arith.constant dense<0.000000e+00> : vector<64x128xf32>
    %45 = tpu.matmul %42, %44, %cst_21 {dimension_numbers = #tpu.dot_dimension_numbers<[1], [0], [0], [1], [0, 0, 1, 1], [], []>} : vector<64x192xbf16>, vector<192x128xbf16>, vector<64x128xf32> -> vector<64x128xf32>
    %46 = arith.addf %41, %45 : vector<64x128xf32>
    %c0_22 = arith.constant 0 : index
    %c0_23 = arith.constant 0 : index
    %47 = vector.load %arg6[%c0_22, %c0_23] : memref<8x128xf32, #tpu.memory_space<vmem>>, vector<1x128xf32>
    %48 = vector.broadcast %47 : vector<1x128xf32> to vector<64x128xf32>
    %49 = arith.mulf %46, %48 : vector<64x128xf32>
    %c1_24 = arith.constant 1 : index
    %c0_25 = arith.constant 0 : index
    %50 = vector.load %arg6[%c1_24, %c0_25] : memref<8x128xf32, #tpu.memory_space<vmem>>, vector<1x128xf32>
    %51 = vector.broadcast %50 : vector<1x128xf32> to vector<64x128xf32>
    %52 = arith.addf %49, %51 : vector<64x128xf32>
    %cst_26 = arith.constant 0.000000e+00 : f32
    %53 = vector.broadcast %cst_26 : f32 to vector<64x128xf32>
    %54 = arith.maximumf %52, %53 : vector<64x128xf32>
    %55 = tpu.iota {dimensions = array<i32: 0>} : vector<64x128xi32>
    %c32_i32_27 = arith.constant 32 : i32
    %c0_i32_28 = arith.constant 0 : i32
    %56 = arith.cmpi eq, %c32_i32_27, %c0_i32_28 : i32
    %c1_i32_29 = arith.constant 1 : i32
    %57 = arith.select %56, %c1_i32_29, %c32_i32_27 : i32
    %58 = vector.broadcast %57 : i32 to vector<64x128xi32>
    %59 = arith.remsi %55, %58 : vector<64x128xi32>
    %c0_i32_30 = arith.constant 0 : i32
    %60 = vector.broadcast %c0_i32_30 : i32 to vector<64x128xi32>
    %61 = arith.cmpi ne, %59, %60 : vector<64x128xi32>
    %c0_i32_31 = arith.constant 0 : i32
    %62 = vector.broadcast %c0_i32_31 : i32 to vector<64x128xi32>
    %63 = arith.cmpi slt, %59, %62 : vector<64x128xi32>
    %c0_i32_32 = arith.constant 0 : i32
    %64 = arith.cmpi slt, %57, %c0_i32_32 : i32
    %65 = vector.broadcast %64 : i1 to vector<64x128xi1>
    %66 = vector.broadcast %65 : vector<64x128xi1> to vector<64x128xi1>
    %67 = arith.xori %63, %66 : vector<64x128xi1>
    %68 = arith.andi %67, %61 : vector<64x128xi1>
    %69 = vector.broadcast %57 : i32 to vector<64x128xi32>
    %70 = arith.addi %59, %69 : vector<64x128xi32>
    %71 = arith.select %68, %70, %59 : vector<64x128xi1>, vector<64x128xi32>
    %c0_i32_33 = arith.constant 0 : i32
    %72 = vector.broadcast %c0_i32_33 : i32 to vector<64x128xi32>
    %73 = arith.cmpi eq, %71, %72 : vector<64x128xi32>
    %c1_i32_34 = arith.constant 1 : i32
    %74 = tpu.dynamic_rotate %54 by %c1_i32_34 dim 0 : vector<64x128xf32>, i32 -> vector<64x128xf32>
    %cst_35 = arith.constant 0.000000e+00 : f32
    %75 = vector.broadcast %cst_35 : f32 to vector<64x128xf32>
    %76 = arith.select %73, %75, %74 : vector<64x128xi1>, vector<64x128xf32>
    %c31_i32_36 = arith.constant 31 : i32
    %77 = vector.broadcast %c31_i32_36 : i32 to vector<64x128xi32>
    %78 = arith.cmpi eq, %71, %77 : vector<64x128xi32>
    %c63_i32_37 = arith.constant 63 : i32
    %79 = tpu.dynamic_rotate %54 by %c63_i32_37 dim 0 : vector<64x128xf32>, i32 -> vector<64x128xf32>
    %cst_38 = arith.constant 0.000000e+00 : f32
    %80 = vector.broadcast %cst_38 : f32 to vector<64x128xf32>
    %81 = arith.select %78, %80, %79 : vector<64x128xi1>, vector<64x128xf32>
    %82 = arith.truncf %76 : vector<64x128xf32> to vector<64x128xbf16>
    %c0_39 = arith.constant 0 : index
    %c0_40 = arith.constant 0 : index
    %c0_41 = arith.constant 0 : index
    %83 = vector.load %arg5[%c0_39, %c0_40, %c0_41] : memref<3x128x128xbf16, #tpu.memory_space<vmem>>, vector<1x128x128xbf16>
    %84 = vector.shape_cast %83 : vector<1x128x128xbf16> to vector<128x128xbf16>
    %cst_42 = arith.constant dense<0.000000e+00> : vector<64x128xf32>
    %85 = tpu.matmul %82, %84, %cst_42 {dimension_numbers = #tpu.dot_dimension_numbers<[1], [0], [0], [1], [0, 0, 1, 1], [], []>} : vector<64x128xbf16>, vector<128x128xbf16>, vector<64x128xf32> -> vector<64x128xf32>
    %86 = arith.truncf %54 : vector<64x128xf32> to vector<64x128xbf16>
    %c1_43 = arith.constant 1 : index
    %c0_44 = arith.constant 0 : index
    %c0_45 = arith.constant 0 : index
    %87 = vector.load %arg5[%c1_43, %c0_44, %c0_45] : memref<3x128x128xbf16, #tpu.memory_space<vmem>>, vector<1x128x128xbf16>
    %88 = vector.shape_cast %87 : vector<1x128x128xbf16> to vector<128x128xbf16>
    %cst_46 = arith.constant dense<0.000000e+00> : vector<64x128xf32>
    %89 = tpu.matmul %86, %88, %cst_46 {dimension_numbers = #tpu.dot_dimension_numbers<[1], [0], [0], [1], [0, 0, 1, 1], [], []>} : vector<64x128xbf16>, vector<128x128xbf16>, vector<64x128xf32> -> vector<64x128xf32>
    %90 = arith.addf %85, %89 : vector<64x128xf32>
    %91 = arith.truncf %81 : vector<64x128xf32> to vector<64x128xbf16>
    %c2_47 = arith.constant 2 : index
    %c0_48 = arith.constant 0 : index
    %c0_49 = arith.constant 0 : index
    %92 = vector.load %arg5[%c2_47, %c0_48, %c0_49] : memref<3x128x128xbf16, #tpu.memory_space<vmem>>, vector<1x128x128xbf16>
    %93 = vector.shape_cast %92 : vector<1x128x128xbf16> to vector<128x128xbf16>
    %cst_50 = arith.constant dense<0.000000e+00> : vector<64x128xf32>
    %94 = tpu.matmul %91, %93, %cst_50 {dimension_numbers = #tpu.dot_dimension_numbers<[1], [0], [0], [1], [0, 0, 1, 1], [], []>} : vector<64x128xbf16>, vector<128x128xbf16>, vector<64x128xf32> -> vector<64x128xf32>
    %95 = arith.addf %90, %94 : vector<64x128xf32>
    %c2_51 = arith.constant 2 : index
    %c0_52 = arith.constant 0 : index
    %96 = vector.load %arg6[%c2_51, %c0_52] : memref<8x128xf32, #tpu.memory_space<vmem>>, vector<1x128xf32>
    %97 = vector.broadcast %96 : vector<1x128xf32> to vector<64x128xf32>
    %98 = arith.mulf %95, %97 : vector<64x128xf32>
    %c3 = arith.constant 3 : index
    %c0_53 = arith.constant 0 : index
    %99 = vector.load %arg6[%c3, %c0_53] : memref<8x128xf32, #tpu.memory_space<vmem>>, vector<1x128xf32>
    %100 = vector.broadcast %99 : vector<1x128xf32> to vector<64x128xf32>
    %101 = arith.addf %98, %100 : vector<64x128xf32>
    %cst_54 = arith.constant 0.000000e+00 : f32
    %102 = vector.broadcast %cst_54 : f32 to vector<64x128xf32>
    %103 = arith.maximumf %101, %102 : vector<64x128xf32>
    %c0_55 = arith.constant 0 : index
    %c0_56 = arith.constant 0 : index
    %104 = vector.load %arg7[%c0_55, %c0_56] : memref<64x128xf32, #tpu.memory_space<vmem>>, vector<64x128xf32>
    tpu.vector_store %arg7[%c0_55, %c0_56], %103 {strides = array<i32>} : memref<64x128xf32, #tpu.memory_space<vmem>>, vector<64x128xf32>,
    return
  }
  func.func @transform_0(%arg0: i32) -> (i32, i32) {
    %c0_i32 = arith.constant 0 : i32
    %c0_i32_0 = arith.constant 0 : i32
    return %arg0, %c0_i32 : i32, i32
  }
  func.func @transform_1(%arg0: i32) -> (i32, i32) {
    %c0_i32 = arith.constant 0 : i32
    %c0_i32_0 = arith.constant 0 : i32
    return %arg0, %c0_i32 : i32, i32
  }
  func.func @transform_2(%arg0: i32) -> (i32, i32) {
    %c0_i32 = arith.constant 0 : i32
    %c0_i32_0 = arith.constant 0 : i32
    %c0_i32_1 = arith.constant 0 : i32
    return %c0_i32, %c0_i32_0 : i32, i32
  }
  func.func @transform_3(%arg0: i32) -> (i32, i32, i32) {
    %c0_i32 = arith.constant 0 : i32
    %c0_i32_0 = arith.constant 0 : i32
    %c0_i32_1 = arith.constant 0 : i32
    %c0_i32_2 = arith.constant 0 : i32
    return %c0_i32, %c0_i32_0, %c0_i32_1 : i32, i32, i32
  }
  func.func @transform_4(%arg0: i32) -> (i32, i32, i32) {
    %c0_i32 = arith.constant 0 : i32
    %c0_i32_0 = arith.constant 0 : i32
    %c0_i32_1 = arith.constant 0 : i32
    %c0_i32_2 = arith.constant 0 : i32
    return %c0_i32, %c0_i32_0, %c0_i32_1 : i32, i32, i32
  }
  func.func @transform_5(%arg0: i32) -> (i32, i32) {
    %c0_i32 = arith.constant 0 : i32
    %c0_i32_0 = arith.constant 0 : i32
    %c0_i32_1 = arith.constant 0 : i32
    return %c0_i32, %c0_i32_0 : i32, i32
  }
  func.func @transform_6(%arg0: i32) -> (i32, i32) {
    %c0_i32 = arith.constant 0 : i32
    %c0_i32_0 = arith.constant 0 : i32
    return %arg0, %c0_i32 : i32, i32
  }
}

</mosaic_0001>

<bundles_post_ra>
// kernel: tpu_custom_call.1
= control target key start
LH: loop header
LB: loop body
LE: loop exit
PB: predicated region body
PF: predicated region fallthrough
CT: control target
= control target key end

     0   :  { %11 = vsyncpa [#allocation3], 0  ;;  %s2467_s0 = inlined_call_operand.vmem [shape: bf16[32,64], index: 0, kind: input, shape index: {}]   ;;  %s2468_s1 = inlined_call_operand.vmem [shape: bf16[64,128], index: 1, kind: input, shape index: {}]   ;;  %s2469_s2 = inlined_call_operand.vmem [shape: bf16[64,32], index: 2, kind: input, shape index: {}]   ;;  %s2470_s3 = inlined_call_operand.hbm [shape: bf16[3,192,128], index: 3, kind: input, shape index: {}]   ;;  %s2471_s4 = inlined_call_operand.hbm [shape: bf16[3,128,128], index: 4, kind: input, shape index: {}]   ;;  %s2472_s5 = inlined_call_operand.vmem [shape: f32[8,128], index: 5, kind: input, shape index: {}]   ;;  %s2473_s6 = inlined_call_operand.hbm [shape: f32[64,128], index: 6, kind: output, shape index: {}]  }
   0x1   :  { %12 = vsyncpa [#allocation6], 0 }
   0x2   :  { %13 = vsyncpa [#allocation4], 0  ;;  %s1958_s21 = smov [#allocation2]   ;;  %s1886_s25 = scalar_lea.hbm %s2470_s3, 4608 }
   0x3   :  { %s25_s22 = sshll.u32 %s1958_s21, 4  ;;  %p1887_p0 = scmp.ne.s32.totalorder %s2470_s3, %s1886_s25  ;;  %s26_s22 = int_to_ptr.vmem [resolvable:$true] %s25_s22 }
   0x4   :  { %p1890_p1 = scmp.lt.u32.totalorder %s1886_s25, %s2470_s3 }
   0x6   :  { %p1892_p2 = pnand %p1890_p1, %p1887_p0 }
   0x8   :  { %1895 = shalt.err (!%p1892_p2)
}
   0x9   :  { %s1896_s30 = scalar_lea.vmem %s26_s22, 4608  ;;  %p1901_p4 = scmp.lt.s32.totalorder %s26_s22, %s26_s22 }
   0xa   :  { %p1897_p3 = scmp.ne.s32.totalorder %s26_s22, %s1896_s30  ;;  %p1902_p5 = scmp.lt.s32.totalorder %s1896_s30, %s1896_s30 }
   0xc   :  { %p1903_p6 = por %p1902_p5, %p1901_p4 }
   0xe   :  { %p1904_p7 = pnand %p1903_p6, %p1897_p3 }
  0x10   :  { %1907 = shalt.err (!%p1904_p7)
}
  0x11   :  { %s1959_s7 = smov 64   ;;  %s1960_s8 = smov 4  }
  0x12   :  { %31 = dma.hbm_to_vmem [thread:$0]  %s2470_s3, 4608, %s26_s22, [#allocation3], %s1959_s7, %s1959_s7, %s1960_s8  }
  0x13   :  { %s1961_s11 = smov [#allocation5]   ;;  %s1908_s15 = scalar_lea.hbm %s2471_s4, 3072 }
  0x14   :  { %s37_s12 = sshll.u32 %s1961_s11, 4  ;;  %p1909_p8 = scmp.ne.s32.totalorder %s2471_s4, %s1908_s15  ;;  %s38_s12 = int_to_ptr.vmem [resolvable:$true] %s37_s12 }
  0x15   :  { %p1912_p9 = scmp.lt.u32.totalorder %s1908_s15, %s2471_s4 }
  0x17   :  { %p1914_p10 = pnand %p1912_p9, %p1909_p8 }
  0x19   :  { %1917 = shalt.err (!%p1914_p10)
}
  0x1a   :  { %s1918_s20 = scalar_lea.vmem %s38_s12, 3072  ;;  %p1923_p12 = scmp.lt.s32.totalorder %s38_s12, %s38_s12 }
  0x1b   :  { %p1919_p11 = scmp.ne.s32.totalorder %s38_s12, %s1918_s20  ;;  %p1924_p13 = scmp.lt.s32.totalorder %s1918_s20, %s1918_s20 }
  0x1d   :  { %p1925_p0 = por %p1924_p13, %p1923_p12 }
  0x1f   :  { %p1926_p1 = pnand %p1925_p0, %p1919_p11 }
  0x21   :  { %1929 = shalt.err (!%p1926_p1)
}
  0x22   :  { %43 = dma.hbm_to_vmem [thread:$0]  %s2471_s4, 3072, %s38_s12, [#allocation6], %s1959_s7, %s1959_s7, %s1960_s8  }
  0x23   :  { %1952 = dma.done.wait [#allocation3], 4608  }
  0x24   :  { %1953 = vsyncadd [#allocation3], 4294962688 }
  0x25   :  { %1954 = dma.done.wait [#allocation6], 3072  }
  0x26   :  { %1955 = vsyncadd [#allocation6], 4294964224  ;;  %v1962_v0 = vmov 0   ;;  %v1812_v1 = vld [vmem:[%s2467_s0] sm:$0xff]   ;;  %v1813_v2 = vld [vmem:[%s2467_s0 + $0x8] sm:$0xff]   ;;  %vm97_vm0 = vcmask 261120   ;;  %v191_v31 = vlaneseq }
  0x27   :  { %709 = vmatprep.subr.bf16.mxu1 %v1962_v0  ;;  %1679 = vmatprep.subr.bf16.mxu0 %v1812_v1  ;;  %v1814_v3 = vld [vmem:[%s2469_s2] sm:$0xff]   ;;  %v1815_v4 = vld [vmem:[%s2469_s2 + $0x8] sm:$0xff]   ;;  %v1816_v5 = vld [vmem:[%s2469_s2 + $0x10] sm:$0xff]   ;;  %vm547_vm3 = vcmask 523264   ;;  %vm1963_vm9 = vmmov 1  }
  0x28   :  { %1680 = vmatpush3.bf16.msra.mxu0 %v1812_v1  ;;  %1683 = vmatprep.mubr.msk.bf16.mxu0 %vm97_vm0, %v1814_v3  ;;  %v1818_v6 = vld [vmem:[#allocation2 + $0x60] sm:$0xff]   ;;  %v1819_v8 = vld [vmem:[#allocation2 + $0x68] sm:$0xff]   ;;  %v1817_v10 = vld [vmem:[%s2469_s2 + $0x18] sm:$0xff]   ;;  %v2085_v36 = vshrl.u32 %v191_v31, 7 }
  0x29   :  { %1681 = vmatprep.subr.bf16.mxu0 %v1813_v2  ;;  %v1821_v7 = vld [vmem:[#allocation2] sm:$0xff]   ;;  %v1823_v9 = vld [vmem:[#allocation2 + $0x8] sm:$0xff]   ;;  %v1820_v11 = vld [vmem:[#allocation2 + $0x70] sm:$0xff]  }
  0x2a   :  { %710 = vmatpush1.bf16.msra.mxu1 %v1821_v7  ;;  %v1825_v12 = vld [vmem:[#allocation2 + $0x10] sm:$0xff]   ;;  %v1822_v13 = vld [vmem:[#allocation2 + $0x78] sm:$0xff]   ;;  %v1824_v15 = vld [vmem:[#allocation2 + $0x80] sm:$0xff]   ;;  %v196_v38 = vadd.s32 32, %v2085_v36  ;;  %v195_v41 = vadd.s32 24, %v2085_v36  ;;  %vm320_vm1 = vcmp.lt.s32.totalorder %v2085_v36, 1 }
  0x2b   :  { %711 = vmatprep.subr.bf16.mxu1 %v1962_v0  ;;  %v1827_v14 = vld [vmem:[#allocation2 + $0x18] sm:$0xff]   ;;  %v1829_v16 = vld [vmem:[#allocation2 + $0x20] sm:$0xff]   ;;  %v1826_v17 = vld [vmem:[#allocation2 + $0x88] sm:$0xff]   ;;  %vm377_vm2 = vcmp.lt.s32.totalorder %v2085_v36, 7  ;;  %v204_v44 = vand.u32 31, %v2085_v36  ;;  %v199_v47 = vadd.s32 56, %v2085_v36 }
  0x2c   :  { %1682 = vmatpush3.bf16.msra.mxu0 %v1813_v2  ;;  %v1831_v18 = vld [vmem:[#allocation2 + $0x28] sm:$0xff]   ;;  %v1828_v19 = vld [vmem:[#allocation2 + $0x90] sm:$0xff]   ;;  %v1830_v21 = vld [vmem:[#allocation2 + $0x98] sm:$0xff]   ;;  %v232_v46 = vand.u32 31, %v196_v38  ;;  %v225_v52 = vand.u32 31, %v195_v41 }
  0x2d   :  { %560 = vmatprep.subr.bf16.mxu0 %v1962_v0  ;;  %v1833_v20 = vld [vmem:[#allocation2 + $0x30] sm:$0xff]   ;;  %v1835_v22 = vld [vmem:[#allocation2 + $0x38] sm:$0xff]   ;;  %v1832_v23 = vld [vmem:[#allocation2 + $0xa0] sm:$0xff]   ;;  %v253_v3 = vand.u32 31, %v199_v47  ;;  %vm2155_vm4 = vcmp.eq.s32.totalorder %v204_v44, 0 }
  0x2e   :  { %712 = vmatpush1.bf16.msra.mxu1 %v1823_v9  ;;  %v1834_v24 = vld [vmem:[#allocation2 + $0xa8] sm:$0xff]   ;;  %v1836_v25 = vld [vmem:[#allocation2 + $0xb0] sm:$0xff]   ;;  %v1837_v26 = vld [vmem:[#allocation2 + $0x40] sm:$0xff]   ;;  %vm2161_vm5 = vcmp.eq.s32.totalorder %v232_v46, 0  ;;  %vm2165_vm6 = vcmp.eq.s32.totalorder %v225_v52, 31 }
  0x2f   :  { %1684 = vmatmul.mubr.msk.bf16.vlgmr.msra.gmra.mrb[0].mxu0 %vm97_vm0, %v1815_v4  ;;  %713 = vmatprep.subr.bf16.mxu1 %v1962_v0  ;;  %v1838_v27 = vld [vmem:[#allocation2 + $0xb8] sm:$0xff]   ;;  %v1839_v28 = vld [vmem:[#allocation2 + $0x48] sm:$0xff]   ;;  %v1841_v29 = vld [vmem:[#allocation2 + $0x50] sm:$0xff]   ;;  %vm2170_vm7 = vcmp.eq.s32.totalorder %v253_v3, 31 }
  0x30   :  { %1687 = vmatprep.mubr.msk.bf16.mxu0 %vm97_vm0, %v1816_v5  ;;  %561 = vmatpush1.bf16.msra.mxu0 %v1818_v6  ;;  %v1842_v30 = vld [vmem:[#allocation2 + $0x58] sm:$0xff]   ;;  %v2076_v32 = vld [vmem:[%s2468_s1] sm:$0xff]   ;;  %v2123_v1 = vld [vmem:[%s2468_s1 + $0x8] sm:$0xff]  }
  0x31   :  { %562 = vmatprep.subr.bf16.mxu0 %v1962_v0  ;;  %v183_v33 = vunpack.c.l.bf16 %v2076_v32  ;;  %v184_v34 = vunpack.c.h.bf16 %v2076_v32  ;;  %v2083_v35 = vld [vmem:[%s2468_s1 + $0x18] sm:$0xff]   ;;  %vm1558_vm8 = vmneg %vm2155_vm4  ;;  %v1878_v36 = vld [vmem:[#allocation5 + $0xa0] sm:$0xff]  }
  0x32   :  { %714 = vmatpush1.bf16.msra.mxu1 %v1825_v12  ;;  %v190_v37 = vunpack.c.h.bf16 %v2083_v35  ;;  %v186_v12 = vunpack.c.h.bf16 %v2123_v1  ;;  %vm2230_vm10 = vmpackc.low %vm1963_vm9, %vm1558_vm8 }
  0x33   :  { %715 = vmatprep.subr.bf16.mxu1 %v1962_v0  ;;  %v304_v39 = vrot.slane %v183_v33, 7  ;;  %v2093_v40 = vrot.slane %v184_v34, 7  ;;  %vm1564_vm11 = vmneg %vm2161_vm5 }
  0x34   :  { %563 = vmatpush1.bf16.msra.mxu0 %v1819_v8  ;;  %v2103_v45 = vrot.slane %v190_v37, 7  ;;  %vm2268_vm12 = vmpackc.low %vm1963_vm9, %vm1564_vm11 }
  0x35   :  { %564 = vmatprep.subr.bf16.mxu0 %v1962_v0  ;;  %v2109_v51 = vsel %vm320_vm1, %v304_v39, %v2093_v40  ;;  %vm1583_vm13 = vmneg %vm2165_vm6 }
  0x36   :  { %716 = vmatpush1.bf16.msra.mxu1 %v1827_v14  ;;  %v2128_v2 = vsel %vm320_vm1, %v2103_v45, %v304_v39  ;;  %vm2317_vm14 = vmpackc.low %vm1583_vm13, %vm1963_vm9 }
  0x37   :  { %1688 = vmatmul.mubr.msk.bf16.gmra.mrb[4].mxu0 %vm97_vm0, %v1817_v10  ;;  %717 = vmatprep.subr.bf16.mxu1 %v1962_v0  ;;  %vm1589_vm15 = vmneg %vm2170_vm7 }
  0x38   :  { %565 = vmatpush1.bf16.msra.mxu0 %v1820_v11  ;;  %v185_v11 = vunpack.c.l.bf16 %v2123_v1  ;;  %vm2342_vm0 = vmpackc.low %vm1589_vm15, %vm1963_vm9 }
  0x39   :  { %566 = vmatprep.subr.bf16.mxu0 %v1962_v0 }
  0x3a   :  { %718 = vmatpush1.bf16.msra.mxu1 %v1829_v16  ;;  %v1850_v16 = vld [vmem:[#allocation2 + $0xe8] sm:$0xff]  }
  0x3b   :  { %719 = vmatprep.subr.bf16.mxu1 %v1962_v0 }
  0x3c   :  { %567 = vmatpush1.bf16.msra.mxu0 %v1822_v13 }
  0x3d   :  { %568 = vmatprep.subr.bf16.mxu0 %v1962_v0 }
  0x3e   :  { %720 = vmatpush1.bf16.msra.mxu1 %v1831_v18 }
  0x3f   :  { %721 = vmatprep.subr.bf16.mxu1 %v1962_v0 }
  0x40   :  { %569 = vmatpush1.bf16.msra.mxu0 %v1824_v15  ;;  %v1560_v15 = vpack.c.bf16 %v2109_v51, %v2128_v2  ;;  %v1845_v2 = vld [vmem:[#allocation2 + $0xc8] sm:$0xff]  }
  0x41   :  { %570 = vmatprep.subr.bf16.mxu0 %v1962_v0 }
  0x42   :  { %722 = vmatpush1.bf16.msra.mxu1 %v1833_v20 }
  0x43   :  { %723 = vmatprep.subr.bf16.mxu1 %v1962_v0 }
  0x44   :  { %571 = vmatpush1.bf16.msra.mxu0 %v1826_v17 }
  0x45   :  { %572 = vmatprep.subr.bf16.mxu0 %v1962_v0 }
  0x46   :  { %724 = vmatpush1.bf16.msra.mxu1 %v1835_v22  ;;  %v1863_v22 = vld [vmem:[#allocation5] sm:$0xff]  }
  0x47   :  { %725 = vmatprep.subr.bf16.mxu1 %v1962_v0 }
  0x48   :  { %573 = vmatpush1.bf16.msra.mxu0 %v1828_v19 }
  0x49   :  { %574 = vmatprep.subr.bf16.mxu0 %v1962_v0 }
  0x4a   :  { %726 = vmatpush1.bf16.msra.mxu1 %v1837_v26 }
  0x4b   :  { %727 = vmatprep.subr.bf16.mxu1 %v1962_v0 }
  0x4c   :  { %575 = vmatpush1.bf16.msra.mxu0 %v1830_v21 }
  0x4d   :  { %576 = vmatprep.subr.bf16.mxu0 %v1962_v0 }
  0x4e   :  { %728 = vmatpush1.bf16.msra.mxu1 %v1839_v28 }
  0x4f   :  { %729 = vmatprep.subr.bf16.mxu1 %v1962_v0 }
  0x50   :  { %577 = vmatpush1.bf16.msra.mxu0 %v1832_v23 }
  0x51   :  { %578 = vmatprep.subr.bf16.mxu0 %v1962_v0 }
  0x52   :  { %730 = vmatpush1.bf16.msra.mxu1 %v1841_v29 }
  0x53   :  { %731 = vmatprep.subr.bf16.mxu1 %v1962_v0 }
  0x54   :  { %579 = vmatpush1.bf16.msra.mxu0 %v1834_v24 }
  0x55   :  { %580 = vmatprep.subr.bf16.mxu0 %v1962_v0 }
  0x56   :  { %732 = vmatpush1.bf16.msra.mxu1 %v1842_v30 }
  0x57   :  { %891 = vmatprep.subr.bf16.mxu1 %v1962_v0 }
  0x58   :  { %581 = vmatpush1.bf16.msra.mxu0 %v1836_v25 }
  0x59   :  { %582 = vmatprep.subr.bf16.mxu0 %v1962_v0 }
  0x5c   :  { %583 = vmatpush1.bf16.msra.mxu0 %v1838_v27 }
  0x5d   :  { %1715 = vmatprep.subr.bf16.mxu0 %v1863_v22 }
 0x102   :  { %v1685_v42 = vpop.f32.mrb[0].mxu0 }
 0x103   :  { %v2098_v43 = vpop.f32.mrb[1].mxu0  ;;  %v309_v48 = vrot.slane %v1685_v42, 7  ;;  %v366_v49 = vrot.slane %v1685_v42, 1 }
 0x104   :  { %v1686_v50 = vpop.f32.mrb[2].mxu0  ;;  %v305_v53 = vrot.slane %v2098_v43, 7  ;;  %v362_v58 = vrot.slane %v2098_v43, 1 }
 0x105   :  { %v311_v54 = vrot.slane %v1686_v50, 7  ;;  %v368_v55 = vrot.slane %v1686_v50, 1  ;;  %v445_v56 = vpack.c.bf16 %v1686_v50, %v1685_v42  ;;  %v147_v57 = vpop.f32.mrb[3].mxu0 }
 0x106   :  { %v307_v59 = vrot.slane %v147_v57, 7  ;;  %v364_v60 = vrot.slane %v147_v57, 1  ;;  %v443_v61 = vpack.c.bf16 %v147_v57, %v2098_v43  ;;  %v308_v57 = vrot.slane %v185_v11, 7 }
 0x107   :  { %v2116_v62 = vsel %vm320_vm1, %v309_v48, %v311_v54  ;;  %v387_v63 = vsel %vm377_vm2, %v366_v49, %v368_v55 }
 0x108   :  { %v2132_v4 = vsel %vm320_vm1, %v307_v59, %v309_v48  ;;  %v2136_v5 = vsel %vm377_vm2, %v364_v60, %v366_v49  ;;  %v2140_v6 = vsel %vm377_vm2, %v362_v58, %v364_v60  ;;  %1541 = vmatprep.mubr.msk.bf16.mxu0 %vm547_vm3, %v443_v61  ;;  %v334_v7 = vsel %vm320_vm1, %v305_v53, %v307_v59  ;;  %v1844_v61 = vld [vmem:[#allocation2 + $0xc0] sm:$0xff]   ;;  %v1879_v60 = vld [vmem:[#allocation5 + $0xa8] sm:$0xff]  }
 0x109   :  { %593 = vmatmul.mubr.bf16.vlgmr.msra.gmra.mrb[8].mxu0 %v2076_v32  ;;  %v413_v8 = vpack.c.bf16 %v2116_v62, %v2132_v4  ;;  %v775_v9 = vpack.c.bf16 %v2136_v5, %v2140_v6  ;;  %v365_v5 = vrot.slane %v185_v11, 1  ;;  %v1855_v6 = vld [vmem:[#allocation2 + $0x110] sm:$0xff]  }
 0x10a   :  { %v2150_v10 = vpop.f32.mrb[4].mxu0  ;;  %1542 = vmatprep.mubr.msk.bf16.mxu0 %vm547_vm3, %v445_v56  ;;  %1716 = vmatpush3.bf16.msra.mxu0 %v1863_v22 }
 0x10b   :  { %v160_v14 = vpop.f32.mrb[5].mxu0  ;;  %v317_v18 = vrot.slane %v2150_v10, 7  ;;  %v374_v23 = vrot.slane %v2150_v10, 1 }
 0x10c   :  { %v313_v19 = vrot.slane %v160_v14, 7  ;;  %v370_v20 = vrot.slane %v160_v14, 1  ;;  %v1690_v21 = vpop.f32.mrb[6].mxu0 }
 0x10d   :  { %v319_v24 = vrot.slane %v1690_v21, 7  ;;  %v376_v25 = vrot.slane %v1690_v21, 1  ;;  %v449_v26 = vpack.c.bf16 %v1690_v21, %v2150_v10  ;;  %v163_v27 = vpop.f32.mrb[7].mxu0  ;;  %v331_v10 = vsel %vm320_vm1, %v2093_v40, %v308_v57  ;;  %v1848_v40 = vld [vmem:[#allocation2 + $0xd8] sm:$0xff]  }
 0x10e   :  { %v328_v28 = vsel %vm320_vm1, %v311_v54, %v313_v19  ;;  %v385_v29 = vsel %vm377_vm2, %v368_v55, %v370_v20  ;;  %v315_v30 = vrot.slane %v163_v27, 7  ;;  %v372_v31 = vrot.slane %v163_v27, 1  ;;  %v2216_v54 = vld [vmem:[%s2468_s1 + $0x10] sm:$0xff]  }
 0x10f   :  { %v2182_v38 = vsel %vm320_vm1, %v317_v18, %v319_v24  ;;  %v379_v39 = vsel %vm377_vm2, %v374_v23, %v376_v25  ;;  %v393_v41 = vsel %vm377_vm2, %v376_v25, %v362_v58  ;;  %v447_v42 = vpack.c.bf16 %v163_v27, %v160_v14 }
 0x110   :  { %v324_v43 = vsel %vm320_vm1, %v315_v30, %v317_v18  ;;  %v326_v44 = vsel %vm320_vm1, %v313_v19, %v315_v30  ;;  %v2194_v46 = vsel %vm377_vm2, %v372_v31, %v374_v23  ;;  %v2198_v47 = vsel %vm377_vm2, %v370_v20, %v372_v31  ;;  %v1852_v30 = vld [vmem:[#allocation2 + $0xf8] sm:$0xff]   ;;  %v1854_v31 = vld [vmem:[#allocation2 + $0x108] sm:$0xff]  }
 0x111   :  { %601 = vmatmul.mubr.bf16.gmra.mrb[12].mxu0 %v2123_v1  ;;  %v336_v48 = vsel %vm320_vm1, %v319_v24, %v305_v53  ;;  %v346_v49 = vsel %vm2161_vm5, 0.0, %v328_v28  ;;  %v417_v50 = vpack.c.bf16 %v2182_v38, %v324_v43  ;;  %v401_v51 = vsel %vm2165_vm6, 0.0, %v385_v29  ;;  %v1849_v24 = vld [vmem:[#allocation2 + $0xe0] sm:$0xff]   ;;  %v1851_v29 = vld [vmem:[#allocation2 + $0xf0] sm:$0xff]   ;;  %v1859_v43 = vld [vmem:[#allocation5 + $0x48] sm:$0xff]  }
 0x112   :  { %1543 = vmatprep.mubr.msk.bf16.mxu0 %vm547_vm3, %v447_v42  ;;  %v338_v52 = vsel %vm2155_vm4, 0.0, %v336_v48  ;;  %v415_v55 = vpack.c.bf16 %v326_v44, %v346_v49  ;;  %v2218_v53 = vpack.c.bf16 %v401_v51, %v387_v63  ;;  %v779_v56 = vpack.c.bf16 %v2194_v46, %v2198_v47  ;;  %v1881_v23 = vld [vmem:[#allocation5 + $0xb8] sm:$0xff]  }
 0x113   :  { %v310_v58 = vrot.slane %v186_v12, 7  ;;  %v411_v59 = vpack.c.bf16 %v334_v7, %v338_v52  ;;  %v409_v62 = vsel %vm2170_vm7, 0.0, %v393_v41  ;;  %v187_v3 = vunpack.c.l.bf16 %v2216_v54  ;;  %v1856_v41 = vld [vmem:[#allocation2 + $0x118] sm:$0xff]  }
 0x114   :  { %v2236_v63 = vpack.c.bf16 %v409_v62, %v379_v39  ;;  %v188_v4 = vunpack.c.h.bf16 %v2216_v54  ;;  %v189_v20 = vunpack.c.l.bf16 %v2083_v35  ;;  %v361_v38 = vrot.slane %v183_v33, 1  ;;  %v1858_v33 = vld [vmem:[#allocation5 + $0x40] sm:$0xff]   ;;  %v1869_v62 = vld [vmem:[#allocation5 + $0x18] sm:$0xff]  }
 0x115   :  { %1557 = vmatprep.mubr.msk.bf16.mxu1 %vm547_vm3, %v411_v59  ;;  %v329_v7 = vsel %vm320_vm1, %v308_v57, %v310_v58  ;;  %v363_v39 = vrot.slane %v184_v34, 1  ;;  %v367_v34 = vrot.slane %v186_v12, 1  ;;  %v369_v11 = vrot.slane %v187_v3, 1  ;;  %v1865_v57 = vld [vmem:[#allocation5 + $0x8] sm:$0xff]   ;;  %v1867_v59 = vld [vmem:[#allocation5 + $0x10] sm:$0xff]  }
 0x116   :  { %1561 = vmatmul.mubr.msk.bf16.vlgmr.msra.gmra.mrb[0].mxu1 %vm2230_vm10, %v1560_v15  ;;  %v412_v13 = vpack.c.bf16 %v329_v7, %v331_v10  ;;  %v314_v14 = vrot.slane %v188_v4, 7  ;;  %v1847_v15 = vld [vmem:[#allocation2 + $0xd0] sm:$0xff]   ;;  %v316_v25 = vrot.slane %v189_v20, 7  ;;  %v371_v12 = vrot.slane %v188_v4, 1  ;;  %1717 = vmatprep.subr.bf16.mxu0 %v1865_v57  ;;  %v1873_v4 = vld [vmem:[#allocation5 + $0x38] sm:$0xff]   ;;  %v2348_v7 = vld [vmem:[#allocation5 + $0x80] sm:$0xff]  }
 0x117   :  { %892 = vmatpush1.bf16.msra.mxu1 %v1844_v61  ;;  %1562 = vmatprep.mubr.msk.bf16.mxu1 %vm547_vm3, %v413_v8  ;;  %v312_v8 = vrot.slane %v187_v3, 7  ;;  %v390_v42 = vsel %vm377_vm2, %v361_v38, %v363_v39  ;;  %v384_v44 = vsel %vm377_vm2, %v367_v34, %v369_v11  ;;  %v373_v49 = vrot.slane %v189_v20, 1  ;;  %v1868_v61 = vld [vmem:[#allocation5 + $0x78] sm:$0xff]   ;;  %v1872_v3 = vld [vmem:[#allocation5 + $0x30] sm:$0xff]  }
 0x118   :  { %893 = vmatprep.subr.bf16.mxu1 %v1962_v0  ;;  %v323_v27 = vsel %vm320_vm1, %v314_v14, %v316_v25  ;;  %v375_v52 = vrot.slane %v190_v37, 1  ;;  %v1861_v37 = vld [vmem:[#allocation5 + $0x58] sm:$0xff]   ;;  %1718 = vmatpush3.bf16.msra.mxu0 %v1865_v57 }
 0x119   :  { %609 = vmatmul.mubr.bf16.gmra.mrb[16].mxu0 %v2216_v54  ;;  %v325_v18 = vsel %vm320_vm1, %v312_v8, %v314_v14  ;;  %v327_v19 = vsel %vm320_vm1, %v310_v58, %v312_v8  ;;  %v380_v17 = vsel %vm377_vm2, %v371_v12, %v373_v49  ;;  %v1866_v58 = vld [vmem:[#allocation5 + $0x70] sm:$0xff]   ;;  %1719 = vmatprep.subr.bf16.mxu0 %v1867_v59 }
 0x11a   :  { %1544 = vmatprep.mubr.msk.bf16.mxu0 %vm547_vm3, %v449_v26  ;;  %v1566_v21 = vpack.c.bf16 %v325_v18, %v327_v19  ;;  %v321_v26 = vsel %vm320_vm1, %v316_v25, %v2103_v45  ;;  %v1853_v45 = vld [vmem:[#allocation2 + $0x100] sm:$0xff]   ;;  %v378_v54 = vsel %vm377_vm2, %v373_v49, %v375_v52  ;;  %v392_v46 = vsel %vm377_vm2, %v375_v52, %v361_v38 }
 0x11b   :  { %894 = vmatpush1.bf16.msra.mxu1 %v1845_v2  ;;  %v416_v28 = vpack.c.bf16 %v321_v26, %v323_v27  ;;  %v1591_v47 = vpack.c.bf16 %v392_v46, %v378_v54  ;;  %v1871_v2 = vld [vmem:[#allocation5 + $0x28] sm:$0xff]   ;;  %v2363_v38 = vld [vmem:[%s2472_s5 + $0x1] ss:$0 sm:$0xff] }
 0x11c   :  { %895 = vmatprep.subr.bf16.mxu1 %v1962_v0  ;;  %1720 = vmatpush3.bf16.msra.mxu0 %v1867_v59 }
 0x11d   :  { %1721 = vmatprep.subr.bf16.mxu0 %v1869_v62 }
 0x11e   :  { %750 = vmatmul.mubr.bf16.gmra.mrb[4].mxu1 %v412_v13 }
 0x11f   :  { %896 = vmatpush1.bf16.msra.mxu1 %v1847_v15  ;;  %1563 = vmatprep.mubr.msk.bf16.mxu1 %vm547_vm3, %v415_v55  ;;  %v1636_v55 = vld [vmem:[%s2472_s5 + $0x3] ss:$0 sm:$0xff] }
 0x120   :  { %897 = vmatprep.subr.bf16.mxu1 %v1962_v0  ;;  %1722 = vmatpush3.bf16.msra.mxu0 %v1869_v62 }
 0x121   :  { %617 = vmatmul.mubr.bf16.gmra.mrb[20].mxu0 %v2083_v35  ;;  %v1860_v35 = vld [vmem:[#allocation5 + $0x50] sm:$0xff]  }
 0x123   :  { %898 = vmatpush1.bf16.msra.mxu1 %v1848_v40 }
 0x124   :  { %899 = vmatprep.subr.bf16.mxu1 %v1962_v0 }
 0x126   :  { %1567 = vmatmul.mubr.msk.bf16.gmra.mrb[8].mxu1 %vm2268_vm12, %v1566_v21 }
 0x127   :  { %900 = vmatpush1.bf16.msra.mxu1 %v1849_v24  ;;  %1568 = vmatprep.mubr.msk.bf16.mxu1 %vm547_vm3, %v417_v50  ;;  %v382_v50 = vsel %vm377_vm2, %v369_v11, %v371_v12 }
 0x128   :  { %901 = vmatprep.subr.bf16.mxu1 %v1962_v0  ;;  %v778_v51 = vpack.c.bf16 %v380_v17, %v382_v50 }
 0x12b   :  { %902 = vmatpush1.bf16.msra.mxu1 %v1850_v16 }
 0x12c   :  { %903 = vmatprep.subr.bf16.mxu1 %v1962_v0 }
 0x12e   :  { %766 = vmatmul.mubr.bf16.gmra.mrb[12].mxu1 %v416_v28 }
 0x12f   :  { %904 = vmatpush1.bf16.msra.mxu1 %v1851_v29  ;;  %1581 = vmatprep.mubr.msk.bf16.mxu1 %vm547_vm3, %v775_v9  ;;  %v388_v9 = vsel %vm377_vm2, %v363_v39, %v365_v5 }
 0x130   :  { %905 = vmatprep.subr.bf16.mxu1 %v1962_v0  ;;  %v774_v32 = vpack.c.bf16 %v388_v9, %v390_v42 }
 0x133   :  { %906 = vmatpush1.bf16.msra.mxu1 %v1852_v30  ;;  %v2358_v30 = vld [vmem:[%s2472_s5] ss:$0 sm:$0xff] }
 0x134   :  { %907 = vmatprep.subr.bf16.mxu1 %v1962_v0 }
 0x137   :  { %908 = vmatpush1.bf16.msra.mxu1 %v1853_v45 }
 0x138   :  { %909 = vmatprep.subr.bf16.mxu1 %v1962_v0 }
 0x13b   :  { %910 = vmatpush1.bf16.msra.mxu1 %v1854_v31 }
 0x13c   :  { %911 = vmatprep.subr.bf16.mxu1 %v1962_v0 }
 0x13f   :  { %912 = vmatpush1.bf16.msra.mxu1 %v1855_v6 }
 0x140   :  { %913 = vmatprep.subr.bf16.mxu1 %v1962_v0  ;;  %v386_v0 = vsel %vm377_vm2, %v365_v5, %v367_v34 }
 0x141   :  { %v1585_v1 = vpack.c.bf16 %v384_v44, %v386_v0 }
 0x143   :  { %914 = vmatpush1.bf16.msra.mxu1 %v1856_v41 }
 0x144   :  { %1691 = vmatprep.subr.bf16.mxu1 %v1858_v33 }
 0x146   :  { %924 = vmatmul.mubr.bf16.vlgmr.msra.gmra.mrb[0].mxu1 %v774_v32 }
 0x147   :  { %1582 = vmatprep.mubr.msk.bf16.mxu1 %vm547_vm3, %v2218_v53  ;;  %1692 = vmatpush3.bf16.msra.mxu1 %v1858_v33  ;;  %v1862_v53 = vld [vmem:[#allocation5 + $0x60] sm:$0xff]  }
 0x148   :  { %1693 = vmatprep.subr.bf16.mxu1 %v1859_v43 }
 0x14b   :  { %1694 = vmatpush3.bf16.msra.mxu1 %v1859_v43 }
 0x14c   :  { %1695 = vmatprep.subr.bf16.mxu1 %v1860_v35 }
 0x14e   :  { %1586 = vmatmul.mubr.msk.bf16.gmra.mrb[4].mxu1 %vm2317_vm14, %v1585_v1 }
 0x14f   :  { %1587 = vmatprep.mubr.msk.bf16.mxu1 %vm547_vm3, %v779_v56  ;;  %1696 = vmatpush3.bf16.msra.mxu1 %v1860_v35  ;;  %v1864_v56 = vld [vmem:[#allocation5 + $0x68] sm:$0xff]  }
 0x150   :  { %1697 = vmatprep.subr.bf16.mxu1 %v1861_v37 }
 0x153   :  { %1698 = vmatpush3.bf16.msra.mxu1 %v1861_v37 }
 0x154   :  { %1699 = vmatprep.subr.bf16.mxu1 %v1862_v53 }
 0x156   :  { %940 = vmatmul.mubr.bf16.gmra.mrb[8].mxu1 %v778_v51 }
 0x157   :  { %1588 = vmatprep.mubr.msk.bf16.mxu1 %vm547_vm3, %v2236_v63  ;;  %1700 = vmatpush3.bf16.msra.mxu1 %v1862_v53  ;;  %v1870_v63 = vld [vmem:[#allocation5 + $0x20] sm:$0xff]  }
 0x158   :  { %1701 = vmatprep.subr.bf16.mxu1 %v1864_v56  ;;  %1723 = vmatprep.subr.bf16.mxu0 %v1870_v63 }
 0x159   :  { %1724 = vmatpush3.bf16.msra.mxu0 %v1870_v63 }
 0x15a   :  { %1725 = vmatprep.subr.bf16.mxu0 %v1871_v2 }
 0x15b   :  { %1702 = vmatpush3.bf16.msra.mxu1 %v1864_v56 }
 0x15c   :  { %1703 = vmatprep.subr.bf16.mxu1 %v1866_v58 }
 0x15d   :  { %1726 = vmatpush3.bf16.msra.mxu0 %v1871_v2 }
 0x15e   :  { %1592 = vmatmul.mubr.msk.bf16.gmra.mrb[12].mxu1 %vm2342_vm0, %v1591_v47  ;;  %1727 = vmatprep.subr.bf16.mxu0 %v1872_v3 }
 0x15f   :  { %1704 = vmatpush3.bf16.msra.mxu1 %v1866_v58 }
 0x160   :  { %1705 = vmatprep.subr.bf16.mxu1 %v1868_v61 }
 0x161   :  { %1728 = vmatpush3.bf16.msra.mxu0 %v1872_v3 }
 0x162   :  { %1729 = vmatprep.subr.bf16.mxu0 %v1873_v4 }
 0x163   :  { %1706 = vmatpush3.bf16.msra.mxu1 %v1868_v61 }
 0x165   :  { %1730 = vmatpush3.bf16.msra.mxu0 %v1873_v4 }
 0x166   :  { %1739 = vmatprep.subr.bf16.mxu0 %v2348_v7 }
 0x1dc   :  { %v594_v10 = vpop.f32.mrb[8].mxu0 }
 0x1dd   :  { %v596_v13 = vpop.f32.mrb[9].mxu0 }
 0x1de   :  { %v597_v8 = vpop.f32.mrb[10].mxu0 }
 0x1df   :  { %v599_v14 = vpop.f32.mrb[11].mxu0 }
 0x1e4   :  { %v602_v15 = vpop.f32.mrb[12].mxu0 }
 0x1e5   :  { %v604_v40 = vpop.f32.mrb[13].mxu0 }
 0x1e6   :  { %v605_v18 = vpop.f32.mrb[14].mxu0 }
 0x1e7   :  { %v607_v19 = vpop.f32.mrb[15].mxu0 }
 0x1ec   :  { %v610_v20 = vpop.f32.mrb[16].mxu0 }
 0x1ed   :  { %v612_v21 = vpop.f32.mrb[17].mxu0 }
 0x1ee   :  { %v613_v24 = vpop.f32.mrb[18].mxu0 }
 0x1ef   :  { %v615_v25 = vpop.f32.mrb[19].mxu0 }
 0x1f4   :  { %v2351_v16 = vpop.f32.mrb[20].mxu0 }
 0x1f5   :  { %v620_v26 = vpop.f32.mrb[21].mxu0 }
 0x1f6   :  { %v2353_v27 = vpop.f32.mrb[22].mxu0 }
 0x1f7   :  { %v623_v28 = vpop.f32.mrb[23].mxu0 }
 0x219   :  { %v925_v29 = vpop.f32.mrb[0].mxu1 }
 0x21a   :  { %v1763_v45 = vadd.f32 %v925_v29, %v594_v10  ;;  %v927_v31 = vpop.f32.mrb[1].mxu1 }
 0x21b   :  { %v928_v39 = vpop.f32.mrb[2].mxu1 }
 0x21c   :  { %v969_v5 = vmul.f32 %v1763_v45, %v2358_v30  ;;  %v1764_v6 = vadd.f32 %v928_v39, %v597_v8  ;;  %v930_v9 = vpop.f32.mrb[3].mxu1 }
 0x21e   :  { %v982_v41 = vadd.f32 %v2363_v38, %v969_v5  ;;  %v970_v42 = vmul.f32 %v1764_v6, %v2358_v30 }
 0x220   :  { %v2368_v33 = vmax.f32 %v982_v41, 0.0  ;;  %v983_v32 = vadd.f32 %v2363_v38, %v970_v42 }
 0x221   :  { %v933_v34 = vpop.f32.mrb[4].mxu1 }
 0x222   :  { %v991_v11 = vmax.f32 %v983_v32, 0.0  ;;  %v1765_v43 = vadd.f32 %v933_v34, %v602_v15  ;;  %v935_v44 = vpop.f32.mrb[5].mxu1  ;;  %v998_v0 = vrot.slane %v2368_v33, 7  ;;  %v1022_v52 = vrot.slane %v2368_v33, 1 }
 0x223   :  { %v936_v1 = vpop.f32.mrb[6].mxu1 }
 0x224   :  { %v999_v12 = vrot.slane %v991_v11, 7  ;;  %v971_v49 = vmul.f32 %v1765_v43, %v2358_v30  ;;  %v1766_v17 = vadd.f32 %v936_v1, %v605_v18  ;;  %v938_v50 = vpop.f32.mrb[7].mxu1  ;;  %v1066_v51 = vpack.c.bf16 %v991_v11, %v2368_v33  ;;  %v1880_v33 = vld [vmem:[#allocation5 + $0xb0] sm:$0xff]  }
 0x225   :  { %v1023_v54 = vrot.slane %v991_v11, 1 }
 0x226   :  { %v984_v46 = vadd.f32 %v2363_v38, %v971_v49  ;;  %v972_v47 = vmul.f32 %v1766_v17, %v2358_v30  ;;  %1707 = vmatprep.mubr.bf16.mxu1 %v1066_v51  ;;  %v2381_v35 = vsel %vm320_vm1, %v998_v0, %v999_v12 }
 0x227   :  { %v2387_v37 = vsel %vm377_vm2, %v1022_v52, %v1023_v54 }
 0x228   :  { %v992_v53 = vmax.f32 %v984_v46, 0.0  ;;  %v985_v22 = vadd.f32 %v2363_v38, %v972_v47 }
 0x229   :  { %v941_v56 = vpop.f32.mrb[8].mxu1 }
 0x22a   :  { %v1000_v57 = vrot.slane %v992_v53, 7  ;;  %v993_v58 = vmax.f32 %v985_v22, 0.0  ;;  %v1767_v59 = vadd.f32 %v941_v56, %v610_v20  ;;  %v943_v61 = vpop.f32.mrb[9].mxu1  ;;  %v1024_v62 = vrot.slane %v992_v53, 1 }
 0x22b   :  { %v944_v63 = vpop.f32.mrb[10].mxu1 }
 0x22c   :  { %v1001_v2 = vrot.slane %v993_v58, 7  ;;  %v1025_v3 = vrot.slane %v993_v58, 1  ;;  %v1067_v4 = vpack.c.bf16 %v993_v58, %v992_v53  ;;  %v973_v10 = vmul.f32 %v1767_v59, %v2358_v30  ;;  %v946_v13 = vpop.f32.mrb[11].mxu1 }
 0x22d   :  { %v1768_v8 = vadd.f32 %v944_v63, %v613_v24  ;;  %v1011_v14 = vsel %vm320_vm1, %v999_v12, %v1000_v57  ;;  %v2395_v15 = vsel %vm377_vm2, %v1023_v54, %v1024_v62 }
 0x22e   :  { %v986_v40 = vadd.f32 %v2363_v38, %v973_v10  ;;  %1708 = vmatmul.mubr.bf16.vlgmr.msra.gmra.mrb[16].mxu1 %v1067_v4  ;;  %v1010_v18 = vsel %vm320_vm1, %v1000_v57, %v1001_v2  ;;  %v2402_v19 = vsel %vm377_vm2, %v1024_v62, %v1025_v3  ;;  %v1313_v20 = vpack.c.bf16 %v2395_v15, %v2387_v37 }
 0x22f   :  { %v974_v21 = vmul.f32 %v1768_v8, %v2358_v30  ;;  %v1047_v24 = vpack.c.bf16 %v1010_v18, %v1011_v14  ;;  %v1635_v18 = vld [vmem:[%s2472_s5 + $0x2] ss:$0 sm:$0xff]  ;;  %s1964_s5 = smov [#allocation7]  }
 0x230   :  { %v994_v25 = vmax.f32 %v986_v40, 0.0  ;;  %s1502_s21 = sshll.u32 %s1964_s5, 4  ;;  %s1503_s21 = int_to_ptr.vmem [resolvable:$true] %s1502_s21 }
 0x231   :  { %v987_v26 = vadd.f32 %v2363_v38, %v974_v21  ;;  %v949_v28 = vpop.f32.mrb[12].mxu1  ;;  %s1930_s22 = scalar_lea.vmem %s1503_s21, 1024  ;;  %p1935_p3 = scmp.lt.s32.totalorder %s1503_s21, %s1503_s21 }
 0x232   :  { %v1002_v29 = vrot.slane %v994_v25, 7  ;;  %v1026_v45 = vrot.slane %v994_v25, 1  ;;  %v1769_v31 = vadd.f32 %v949_v28, %v2351_v16  ;;  %v951_v39 = vpop.f32.mrb[13].mxu1  ;;  %p1931_p2 = scmp.ne.s32.totalorder %s1503_s21, %s1930_s22  ;;  %p1936_p4 = scmp.lt.s32.totalorder %s1930_s22, %s1930_s22 }
 0x233   :  { %v995_v5 = vmax.f32 %v987_v26, 0.0  ;;  %v952_v6 = vpop.f32.mrb[14].mxu1 }
 0x234   :  { %v1033_v9 = vsel %vm377_vm2, %v1025_v3, %v1026_v45  ;;  %v975_v41 = vmul.f32 %v1769_v31, %v2358_v30  ;;  %v1770_v42 = vadd.f32 %v952_v6, %v2353_v27  ;;  %v954_v32 = vpop.f32.mrb[15].mxu1  ;;  %v1009_v34 = vsel %vm320_vm1, %v1001_v2, %v1002_v29  ;;  %v1875_v2 = vld [vmem:[#allocation5 + $0x88] sm:$0xff]   ;;  %p1937_p5 = por %p1936_p4, %p1935_p3 }
 0x235   :  { %v1003_v11 = vrot.slane %v995_v5, 7  ;;  %v1068_v43 = vpack.c.bf16 %v995_v5, %v994_v25  ;;  %v1629_v44 = vpack.c.bf16 %v1033_v9, %v2402_v19  ;;  %v1027_v1 = vrot.slane %v995_v5, 1 }
 0x236   :  { %v988_v16 = vadd.f32 %v2363_v38, %v975_v41  ;;  %v976_v12 = vmul.f32 %v1770_v42, %v2358_v30  ;;  %p1938_p6 = pnand %p1937_p5, %p1931_p2 }
 0x237   :  { %1711 = vmatprep.mubr.bf16.mxu1 %v1068_v43  ;;  %v1008_v49 = vsel %vm320_vm1, %v1002_v29, %v1003_v11  ;;  %v1032_v27 = vsel %vm377_vm2, %v1026_v45, %v1027_v1 }
 0x238   :  { %v996_v17 = vmax.f32 %v988_v16, 0.0  ;;  %v989_v50 = vadd.f32 %v2363_v38, %v976_v12  ;;  %v1617_v51 = vpack.c.bf16 %v1008_v49, %v1009_v34 }
 0x23a   :  { %v997_v54 = vmax.f32 %v989_v50, 0.0  ;;  %v1004_v46 = vrot.slane %v996_v17, 7  ;;  %v1028_v47 = vrot.slane %v996_v17, 1 }
 0x23c   :  { %v1005_v37 = vrot.slane %v997_v54, 7  ;;  %v1029_v53 = vrot.slane %v997_v54, 1  ;;  %v1069_v22 = vpack.c.bf16 %v997_v54, %v996_v17  ;;  %v1007_v30 = vsel %vm320_vm1, %v1003_v11, %v1004_v46 }
 0x23d   :  { %v1031_v56 = vsel %vm377_vm2, %v1027_v1, %v1028_v47 }
 0x23e   :  { %1712 = vmatmul.mubr.bf16.gmra.mrb[20].mxu1 %v1069_v22  ;;  %v1013_v57 = vsel %vm320_vm1, %v1005_v37, %v998_v0  ;;  %v1006_v38 = vsel %vm320_vm1, %v1004_v46, %v1005_v37  ;;  %v1315_v58 = vpack.c.bf16 %v1031_v56, %v1032_v27  ;;  %v1030_v59 = vsel %vm377_vm2, %v1028_v47, %v1029_v53  ;;  %v1876_v0 = vld [vmem:[#allocation5 + $0x90] sm:$0xff]  }
 0x23f   :  { %v1613_v61 = vpack.c.bf16 %v2381_v35, %v1013_v57  ;;  %v1049_v62 = vpack.c.bf16 %v1006_v38, %v1007_v30  ;;  %v1037_v63 = vsel %vm377_vm2, %v1029_v53, %v1022_v52  ;;  %v1877_v35 = vld [vmem:[#allocation5 + $0x98] sm:$0xff]  }
 0x240   :  { %v1633_v3 = vpack.c.bf16 %v1037_v63, %v1030_v59 }
 0x241   :  { %1731 = vmatprep.mubr.msk.bf16.mxu0 %vm2230_vm10, %v1613_v61 }
 0x242   :  { %1732 = vmatmul.mubr.bf16.vlgmr.msra.gmra.mrb[24].mxu0 %v1047_v24 }
 0x243   :  { %1740 = vmatpush3.bf16.msra.mxu0 %v2348_v7  ;;  %1735 = vmatprep.mubr.msk.bf16.mxu0 %vm2268_vm12, %v1617_v51 }
 0x244   :  { %1741 = vmatprep.subr.bf16.mxu0 %v1875_v2 }
 0x247   :  { %1742 = vmatpush3.bf16.msra.mxu0 %v1875_v2 }
 0x248   :  { %1743 = vmatprep.subr.bf16.mxu0 %v1876_v0 }
 0x24a   :  { %1736 = vmatmul.mubr.bf16.gmra.mrb[28].mxu0 %v1049_v62 }
 0x24b   :  { %1744 = vmatpush3.bf16.msra.mxu0 %v1876_v0  ;;  %1755 = vmatprep.mubr.bf16.mxu0 %v1313_v20 }
 0x24c   :  { %1745 = vmatprep.subr.bf16.mxu0 %v1877_v35 }
 0x24f   :  { %1746 = vmatpush3.bf16.msra.mxu0 %v1877_v35 }
 0x250   :  { %1747 = vmatprep.subr.bf16.mxu0 %v1878_v36 }
 0x253   :  { %1748 = vmatpush3.bf16.msra.mxu0 %v1878_v36 }
 0x254   :  { %1749 = vmatprep.subr.bf16.mxu0 %v1879_v60 }
 0x257   :  { %1750 = vmatpush3.bf16.msra.mxu0 %v1879_v60 }
 0x258   :  { %1751 = vmatprep.subr.bf16.mxu0 %v1880_v33 }
 0x25b   :  { %1752 = vmatpush3.bf16.msra.mxu0 %v1880_v33 }
 0x25c   :  { %1753 = vmatprep.subr.bf16.mxu0 %v1881_v23 }
 0x25f   :  { %1754 = vmatpush3.bf16.msra.mxu0 %v1881_v23 }
 0x262   :  { %1756 = vmatmul.mubr.msk.bf16.vlgmr.msra.gmra.mrb[24].mxu0 %vm2317_vm14, %v1629_v44 }
 0x263   :  { %1759 = vmatprep.mubr.bf16.mxu0 %v1315_v58 }
 0x26a   :  { %1760 = vmatmul.mubr.msk.bf16.gmra.mrb[28].mxu0 %vm2342_vm0, %v1633_v3 }
 0x301   :  { %v1709_v7 = vpop.f32.mrb[16].mxu1 }
 0x302   :  { %v1169_v52 = vpop.f32.mrb[17].mxu1 }
 0x303   :  { %v1710_v4 = vpop.f32.mrb[18].mxu1 }
 0x304   :  { %v1172_v10 = vpop.f32.mrb[19].mxu1 }
 0x311   :  { %v1713_v13 = vpop.f32.mrb[20].mxu1 }
 0x312   :  { %v1185_v8 = vpop.f32.mrb[21].mxu1 }
 0x313   :  { %v1714_v14 = vpop.f32.mrb[22].mxu1 }
 0x314   :  { %v1188_v15 = vpop.f32.mrb[23].mxu1 }
 0x335   :  { %v1757_v40 = vpop.f32.mrb[24].mxu0 }
 0x336   :  { %v1771_v19 = vadd.f32 %v1757_v40, %v1709_v7  ;;  %v1416_v48 = vpop.f32.mrb[25].mxu0 }
 0x337   :  { %v1772_v20 = vadd.f32 %v1416_v48, %v1169_v52  ;;  %v1758_v21 = vpop.f32.mrb[26].mxu0 }
 0x338   :  { %v1462_v24 = vmul.f32 %v1771_v19, %v1635_v18  ;;  %v1773_v25 = vadd.f32 %v1758_v21, %v1710_v4  ;;  %v1419_v26 = vpop.f32.mrb[27].mxu0 }
 0x339   :  { %v1460_v28 = vmul.f32 %v1772_v20, %v1635_v18  ;;  %v1774_v29 = vadd.f32 %v1419_v26, %v1172_v10 }
 0x33a   :  { %v1475_v45 = vadd.f32 %v1636_v55, %v1462_v24  ;;  %v1463_v31 = vmul.f32 %v1773_v25, %v1635_v18 }
 0x33b   :  { %v1473_v39 = vadd.f32 %v1636_v55, %v1460_v28  ;;  %v1461_v5 = vmul.f32 %v1774_v29, %v1635_v18 }
 0x33c   :  { %v1483_v6 = vmax.f32 %v1475_v45, 0.0  ;;  %v1476_v9 = vadd.f32 %v1636_v55, %v1463_v31 }
 0x33d   :  { %v1481_v41 = vmax.f32 %v1473_v39, 0.0  ;;  %v1474_v42 = vadd.f32 %v1636_v55, %v1461_v5  ;;  %v1761_v32 = vpop.f32.mrb[28].mxu0 }
 0x33e   :  { %1491 = vst [vmem:[#allocation7 + $0x10] sm:$0xff] %v1483_v6  ;;  %v1484_v34 = vmax.f32 %v1476_v9, 0.0  ;;  %v1775_v11 = vadd.f32 %v1761_v32, %v1713_v13  ;;  %v1432_v43 = vpop.f32.mrb[29].mxu0 }
 0x33f   :  { %1489 = vst [vmem:[#allocation7] sm:$0xff] %v1481_v41  ;;  %v1482_v44 = vmax.f32 %v1474_v42, 0.0  ;;  %v1776_v1 = vadd.f32 %v1432_v43, %v1185_v8  ;;  %v1762_v16 = vpop.f32.mrb[30].mxu0 }
 0x340   :  { %1492 = vst [vmem:[#allocation7 + $0x18] sm:$0xff] %v1484_v34  ;;  %v1466_v12 = vmul.f32 %v1775_v11, %v1635_v18  ;;  %v1777_v49 = vadd.f32 %v1762_v16, %v1714_v14  ;;  %v1435_v27 = vpop.f32.mrb[31].mxu0 }
 0x341   :  { %1490 = vst [vmem:[#allocation7 + $0x8] sm:$0xff] %v1482_v44  ;;  %v1464_v17 = vmul.f32 %v1776_v1, %v1635_v18  ;;  %v1778_v50 = vadd.f32 %v1435_v27, %v1188_v15 }
 0x342   :  { %v1479_v51 = vadd.f32 %v1636_v55, %v1466_v12  ;;  %v1467_v54 = vmul.f32 %v1777_v49, %v1635_v18 }
 0x343   :  { %v1477_v46 = vadd.f32 %v1636_v55, %v1464_v17  ;;  %v1465_v47 = vmul.f32 %v1778_v50, %v1635_v18 }
 0x344   :  { %v1487_v37 = vmax.f32 %v1479_v51, 0.0  ;;  %v1480_v53 = vadd.f32 %v1636_v55, %v1467_v54 }
 0x345   :  { %v1485_v22 = vmax.f32 %v1477_v46, 0.0  ;;  %v1478_v30 = vadd.f32 %v1636_v55, %v1465_v47 }
 0x346   :  { %1495 = vst [vmem:[#allocation7 + $0x30] sm:$0xff] %v1487_v37  ;;  %v1488_v56 = vmax.f32 %v1480_v53, 0.0 }
 0x347   :  { %1493 = vst [vmem:[#allocation7 + $0x20] sm:$0xff] %v1485_v22  ;;  %v1486_v57 = vmax.f32 %v1478_v30, 0.0 }
 0x348   :  { %1496 = vst [vmem:[#allocation7 + $0x38] sm:$0xff] %v1488_v56 }
 0x349   :  { %1494 = vst [vmem:[#allocation7 + $0x28] sm:$0xff] %v1486_v57 }
 0x34a   :  { %1941 = shalt.err (!%p1938_p6)
}
 0x34b   :  { %s1942_s25 = scalar_lea.hbm %s2473_s6, 1024 }
 0x34c   :  { %p1943_p7 = scmp.ne.s32.totalorder %s2473_s6, %s1942_s25  ;;  %p1946_p8 = scmp.lt.u32.totalorder %s1942_s25, %s2473_s6 }
 0x34e   :  { %p1948_p9 = pnand %p1946_p8, %p1943_p7 }
 0x350   :  { %1951 = shalt.err (!%p1948_p9)
}
 0x351   :  { %s1965_s29 = smov 128   ;;  %s1966_s30 = smov 8  }
 0x352   :  { %1508 = dma.vmem_to_hbm [thread:$0]  %s1503_s21, 1024, %s2473_s6, [#allocation4], %s1965_s29, %s1965_s29, %s1966_s30  }
 0x353   :  { %1956 = dma.done.wait [#allocation4], 1024  }
 0x354   :  { %1957 = vsyncadd [#allocation4], 4294966272 }
 0x355   :  { %1512 = vsyncpa [#allocation3], 1 }
 0x356   :  { %1513 = vsyncpa [#allocation6], 1 }
 0x357   :  { %1514 = vsyncpa [#allocation4], 1 }

</bundles_post_ra>
